<compile_context>
chip_gen: v7x
topology: tpu7x:2x2x1
jax: 0.10.0
libtpu: 0.0.40
codegen_flags: <defaults>
</compile_context>

<pallas_src>
import functools
import math

import jax
import jax.numpy as jnp
from jax.experimental import pallas as pl
from jax.experimental.pallas import tpu as pltpu


# ----------------------------------------------------------------------------
# Helpers
# ----------------------------------------------------------------------------
def _round_up(x, m):
    return ((x + m - 1) // m) * m


def _gelu_exact(x):
    # torch.nn.functional.gelu default: 0.5 * x * (1 + erf(x / sqrt(2)))
    inv_sqrt2 = jnp.asarray(1.0 / math.sqrt(2.0), dtype=x.dtype)
    return 0.5 * x * (1.0 + jax.lax.erf(x * inv_sqrt2))


def _gelu(x, approximate):
    if approximate:
        # tanh form -> EUP slot (nearly free next to the MXU on v6e/v7x).
        return jax.nn.gelu(x, approximate=True)
    return _gelu_exact(x)


def _pick_row_tile(M, max_tm=512):
    """Largest tile from a ladder with bounded (<=12.5%) padding waste."""
    for tm in (1024, 512, 256, 128, 64, 32, 16, 8):
        if tm > max_tm:
            continue
        pad = _round_up(M, tm) - M
        if pad * 8 <= M or tm == 8:
            return tm
    return 8


def _pick_hidden_tile(H, requested, align=256):
    """Largest multiple-of-`align` divisor of H that is <= requested.

    Falls back to 128 alignment, then to full H (legal full-dim block).
    """
    for a in (align, 128):
        best = None
        t = a
        while t <= H:
            if H % t == 0 and t <= requested:
                best = t
            t += a
        if best is not None:
            return best
    return H


def _vmem_limit_bytes(tm, C, H, th, x_bytes, out_bytes, w_bytes, resident):
    th_eff = H if resident else th
    w = 2 * (C * th_eff + th_eff * C) * w_bytes          # double-buffered weights
    x_t = 2 * tm * C * x_bytes                            # double-buffered x tile
    o_t = 2 * tm * C * out_bytes                          # double-buffered out tile
    inter = tm * th_eff * (4 + w_bytes)                   # f32 hid + bf16 copy
    acc = 0 if resident else tm * C * 4                   # f32 accumulator
    est = w + x_t + o_t + inter + acc
    return int(min(max(2 * est, 32 * 1024 * 1024), 64 * 1024 * 1024))


# ----------------------------------------------------------------------------
# Kernels
# ----------------------------------------------------------------------------
def mlp_kernel_resident(x_ref, w1_ref, w2_ref, o_ref, *, approximate_gelu):
    # x_ref : (tm, C)   row tile of flattened input
    # w1_ref: (C, H)    full c_fc weight (resident in VMEM, DMA'd once)
    # w2_ref: (H, C)    full c_proj weight (resident in VMEM, DMA'd once)
    # o_ref : (tm, C)   output tile (written directly, no accumulator)
    x = x_ref[...].astype(w1_ref.dtype)
    hid = jnp.dot(x, w1_ref[...], preferred_element_type=jnp.float32)
    hid = _gelu(hid, approximate_gelu)
    y = jnp.dot(hid.astype(w2_ref.dtype), w2_ref[...],
                preferred_element_type=jnp.float32)
    o_ref[...] = y.astype(o_ref.dtype)


def mlp_kernel_tiled(x_ref, w1_ref, w2_ref, o_ref, acc_ref, *, approximate_gelu):
    # Fallback when the weights are too large to pin in VMEM.
    # x_ref : (tm, C), w1_ref: (C, th), w2_ref: (th, C)
    # o_ref : (tm, C)  (resident across the hidden reduction axis)
    # acc_ref: (tm, C) f32 accumulator scratch
    h_idx = pl.program_id(1)

    x = x_ref[...].astype(w1_ref.dtype)
    hid = jnp.dot(x, w1_ref[...], preferred_element_type=jnp.float32)
    hid = _gelu(hid, approximate_gelu)
    part = jnp.dot(hid.astype(w2_ref.dtype), w2_ref[...],
                   preferred_element_type=jnp.float32)

    @pl.when(h_idx == 0)
    def _():
        acc_ref[...] = part           # direct assign: no zero-init RMW

    @pl.when(h_idx > 0)
    def _():
        acc_ref[...] += part

    @pl.when(h_idx == pl.num_programs(1) - 1)
    def _():
        o_ref[...] = acc_ref[...].astype(o_ref.dtype)


# ----------------------------------------------------------------------------
# Wrapper
# ----------------------------------------------------------------------------
def prepare_mlp_weights(w_fc, w_proj, compute_dtype=jnp.bfloat16):
    """One-time weight prep (hoisted out of the forward path).

    PyTorch layout: w_fc (4C, C), w_proj (C, 4C).
    Returns w1 (C, 4C), w2 (4C, C) in the MXU compute dtype.
    """
    return w_fc.T.astype(compute_dtype), w_proj.T.astype(compute_dtype)


def mlp_forward(x, w1, w2, *, max_tm=512, th_request=512,
                approximate_gelu=False,
                resident_weight_budget=24 * 1024 * 1024):
    """x: (B, T, C); w1: (C, 4C); w2: (4C, C) (already prepared)."""
    B, T, C = x.shape
    C1, H = w1.shape
    assert C1 == C and w2.shape == (H, C)

    M = B * T
    tm = _pick_row_tile(M, max_tm)
    M_pad = _round_up(M, tm)

    x2d = x.reshape(M, C)
    if M_pad != M:
        x2d = jnp.pad(x2d, ((0, M_pad - M), (0, 0)))

    w_bytes = jnp.dtype(w1.dtype).itemsize
    x_bytes = jnp.dtype(x.dtype).itemsize
    out_bytes = x_bytes
    weight_total = 2 * C * H * w_bytes            # one copy of both matrices
    resident = weight_total <= resident_weight_budget

    flops = 4 * M_pad * C * H                      # two matmuls, 2*M*C*H each
    transcendentals = M_pad * H                    # one erf/tanh per hidden elem
    bytes_accessed = (M * C * x_bytes + weight_total + M * C * out_bytes)
    cost = pl.CostEstimate(flops=flops, transcendentals=transcendentals,
                           bytes_accessed=bytes_accessed)

    if resident:
        # Weights pinned in VMEM (constant block index -> DMA'd once); single
        # pass over the hidden dim, no accumulator.
        grid = (M_pad // tm,)
        vmem_limit = _vmem_limit_bytes(tm, C, H, H, x_bytes, out_bytes,
                                       w_bytes, resident=True)
        kernel = functools.partial(mlp_kernel_resident,
                                   approximate_gelu=approximate_gelu)
        out2d = pl.pallas_call(
            kernel,
            out_shape=jax.ShapeDtypeStruct((M_pad, C), x.dtype),
            grid_spec=pltpu.PrefetchScalarGridSpec(
                num_scalar_prefetch=0,
                grid=grid,
                in_specs=[
                    pl.BlockSpec((tm, C), lambda i: (i, 0)),   # x row tile
                    pl.BlockSpec((C, H), lambda i: (0, 0)),    # W1 resident
                    pl.BlockSpec((H, C), lambda i: (0, 0)),    # W2 resident
                ],
                out_specs=pl.BlockSpec((tm, C), lambda i: (i, 0)),
            ),
            compiler_params=pltpu.CompilerParams(
                dimension_semantics=("parallel",),
                vmem_limit_bytes=vmem_limit),
            cost_estimate=cost,
        )(x2d, w1, w2)
    else:
        # Tiled hidden reduction (large models whose weights don't fit VMEM).
        th = _pick_hidden_tile(H, th_request)
        grid = (M_pad // tm, H // th)
        vmem_limit = _vmem_limit_bytes(tm, C, H, th, x_bytes, out_bytes,
                                       w_bytes, resident=False)
        kernel = functools.partial(mlp_kernel_tiled,
                                   approximate_gelu=approximate_gelu)
        out2d = pl.pallas_call(
            kernel,
            out_shape=jax.ShapeDtypeStruct((M_pad, C), x.dtype),
            grid_spec=pltpu.PrefetchScalarGridSpec(
                num_scalar_prefetch=0,
                grid=grid,
                in_specs=[
                    pl.BlockSpec((tm, C), lambda i, h: (i, 0)),   # x row tile
                    pl.BlockSpec((C, th), lambda i, h: (0, h)),   # W1 slice
                    pl.BlockSpec((th, C), lambda i, h: (h, 0)),   # W2 slice
                ],
                out_specs=pl.BlockSpec((tm, C), lambda i, h: (i, 0)),
                scratch_shapes=[pltpu.VMEM((tm, C), jnp.float32)],
            ),
            compiler_params=pltpu.CompilerParams(
                dimension_semantics=("parallel", "arbitrary"),
                vmem_limit_bytes=vmem_limit),
            cost_estimate=cost,
        )(x2d, w1, w2)

    return out2d[:M].reshape(B, T, C)


# ----------------------------------------------------------------------------
# References
# ----------------------------------------------------------------------------
def mlp_reference_matched(x, w_fc, w_proj, compute_dtype=jnp.bfloat16):
    """Reference with the same precision strategy as the kernel."""
    w1 = w_fc.T.astype(compute_dtype)
    w2 = w_proj.T.astype(compute_dtype)
    h = jnp.dot(x.astype(compute_dtype), w1, preferred_element_type=jnp.float32)
    h = _gelu_exact(h)
    y = jnp.dot(h.astype(compute_dtype), w2, preferred_element_type=jnp.float32)
    return y.astype(x.dtype)


def mlp_reference_f32(x, w_fc, w_proj):
    h = jnp.einsum("btc,hc->bth", x, w_fc)
    h = _gelu_exact(h)
    return jnp.einsum("bth,ch->btc", h, w_proj)


# ----------------------------------------------------------------------------
# Self-test
# ----------------------------------------------------------------------------
if __name__ == "__main__":
    # Small GPT-2-like config: n_embd=32 -> hidden=128; batch=2, seq=8.
    B, T, C = 2, 8, 32
    H = 4 * C

    key = jax.random.PRNGKey(0)
    kx, kfc, kproj = jax.random.split(key, 3)

    x = jax.random.normal(kx, (B, T, C), dtype=jnp.float32)
    # nn.Linear default init: U(-1/sqrt(fan_in), 1/sqrt(fan_in))
    w_fc = jax.random.uniform(kfc, (H, C), dtype=jnp.float32,
                              minval=-1.0 / math.sqrt(C), maxval=1.0 / math.sqrt(C))
    w_proj = jax.random.uniform(kproj, (C, H), dtype=jnp.float32,
                                minval=-1.0 / math.sqrt(H), maxval=1.0 / math.sqrt(H))

    # One-time weight preparation (transpose + bf16 cast), outside the hot path.
    w1, w2 = prepare_mlp_weights(w_fc, w_proj)

    # Resident-weight fast path (default, exact GELU to match torch).
    out = mlp_forward(x, w1, w2)
    out = jax.block_until_ready(out)
    assert out.shape == (B, T, C)

    ref_m = mlp_reference_matched(x, w_fc, w_proj)
    assert jnp.allclose(out, ref_m, atol=1e-4, rtol=1e-4), \
        "mismatch vs matched-precision ref (resident path)"

    ref_f32 = mlp_reference_f32(x, w_fc, w_proj)
    assert jnp.allclose(out, ref_f32, atol=5e-2, rtol=5e-2), \
        "mismatch vs f32 reference (resident path)"

    # Also exercise the tiled fallback path (force weights "too big" for VMEM).
    out_tiled = mlp_forward(x, w1, w2, resident_weight_budget=0, th_request=128)
    out_tiled = jax.block_until_ready(out_tiled)
    assert jnp.allclose(out_tiled, ref_m, atol=1e-4, rtol=1e-4), \
        "mismatch vs matched-precision ref (tiled path)"

    print("KERNEL_OK")
</pallas_src>

<mosaic_0001>
module attributes {stable_mosaic.version = 11 : i64} {
  func.func @mlp_kernel_resident(%arg0: i32, %arg1: memref<16x32xf32, #tpu.memory_space<vmem>>, %arg2: memref<32x128xbf16, #tpu.memory_space<vmem>>, %arg3: memref<128x32xbf16, #tpu.memory_space<vmem>>, %arg4: memref<16x32xf32, #tpu.memory_space<vmem>>) attributes {dimension_semantics = [#tpu.dimension_semantics<parallel>], iteration_bounds = array<i64: 1>, scalar_prefetch = 0 : i64, scratch_operands = 0 : i64, tpu.core_type = #tpu.core_type<tc>, window_params = [{transform_indices = @transform_0, window_bounds = array<i64: 16, 32>}, {pipeline_mode = #tpu.pipeline_mode<synchronous>, transform_indices = @transform_1, window_bounds = array<i64: 32, 128>}, {pipeline_mode = #tpu.pipeline_mode<synchronous>, transform_indices = @transform_2, window_bounds = array<i64: 128, 32>}, {transform_indices = @transform_3, window_bounds = array<i64: 16, 32>}]} {
    %c0 = arith.constant 0 : index
    %c0_0 = arith.constant 0 : index
    %0 = vector.load %arg1[%c0, %c0_0] : memref<16x32xf32, #tpu.memory_space<vmem>>, vector<16x32xf32>
    %1 = arith.truncf %0 : vector<16x32xf32> to vector<16x32xbf16>
    %c0_1 = arith.constant 0 : index
    %c0_2 = arith.constant 0 : index
    %2 = vector.load %arg2[%c0_1, %c0_2] : memref<32x128xbf16, #tpu.memory_space<vmem>>, vector<32x128xbf16>
    %cst = arith.constant dense<0.000000e+00> : vector<16x128xf32>
    %3 = tpu.matmul %1, %2, %cst {dimension_numbers = #tpu.dot_dimension_numbers<[1], [0], [0], [1], [0, 0, 1, 1], [], []>} : vector<16x32xbf16>, vector<32x128xbf16>, vector<16x128xf32> -> vector<16x128xf32>
    %cst_3 = arith.constant 5.000000e-01 : f32
    %4 = vector.broadcast %cst_3 : f32 to vector<16x128xf32>
    %5 = arith.mulf %4, %3 : vector<16x128xf32>
    %cst_4 = arith.constant 0.707106769 : f32
    %6 = vector.broadcast %cst_4 : f32 to vector<16x128xf32>
    %7 = arith.mulf %3, %6 : vector<16x128xf32>
    %8 = math.erf %7 : vector<16x128xf32>
    %cst_5 = arith.constant 1.000000e+00 : f32
    %9 = vector.broadcast %cst_5 : f32 to vector<16x128xf32>
    %10 = arith.addf %9, %8 : vector<16x128xf32>
    %11 = arith.mulf %5, %10 : vector<16x128xf32>
    %12 = arith.truncf %11 : vector<16x128xf32> to vector<16x128xbf16>
    %c0_6 = arith.constant 0 : index
    %c0_7 = arith.constant 0 : index
    %13 = vector.load %arg3[%c0_6, %c0_7] : memref<128x32xbf16, #tpu.memory_space<vmem>>, vector<128x32xbf16>
    %cst_8 = arith.constant dense<0.000000e+00> : vector<16x32xf32>
    %14 = tpu.matmul %12, %13, %cst_8 {dimension_numbers = #tpu.dot_dimension_numbers<[1], [0], [0], [1], [0, 0, 1, 1], [], []>} : vector<16x128xbf16>, vector<128x32xbf16>, vector<16x32xf32> -> vector<16x32xf32>
    %c0_9 = arith.constant 0 : index
    %c0_10 = arith.constant 0 : index
    %15 = vector.load %arg4[%c0_9, %c0_10] : memref<16x32xf32, #tpu.memory_space<vmem>>, vector<16x32xf32>
    tpu.vector_store %arg4[%c0_9, %c0_10], %14 {strides = array<i32>} : memref<16x32xf32, #tpu.memory_space<vmem>>, vector<16x32xf32>,
    return
  }
  func.func @transform_0(%arg0: i32) -> (i32, i32) {
    %c0_i32 = arith.constant 0 : i32
    %c0_i32_0 = arith.constant 0 : i32
    return %arg0, %c0_i32 : i32, i32
  }
  func.func @transform_1(%arg0: i32) -> (i32, i32) {
    %c0_i32 = arith.constant 0 : i32
    %c0_i32_0 = arith.constant 0 : i32
    %c0_i32_1 = arith.constant 0 : i32
    return %c0_i32, %c0_i32_0 : i32, i32
  }
  func.func @transform_2(%arg0: i32) -> (i32, i32) {
    %c0_i32 = arith.constant 0 : i32
    %c0_i32_0 = arith.constant 0 : i32
    %c0_i32_1 = arith.constant 0 : i32
    return %c0_i32, %c0_i32_0 : i32, i32
  }
  func.func @transform_3(%arg0: i32) -> (i32, i32) {
    %c0_i32 = arith.constant 0 : i32
    %c0_i32_0 = arith.constant 0 : i32
    return %arg0, %c0_i32 : i32, i32
  }
}

</mosaic_0001>

<bundles_post_ra>
// kernel: tpu_custom_call.1
= control target key start
LH: loop header
LB: loop body
LE: loop exit
PB: predicated region body
PF: predicated region fallthrough
CT: control target
= control target key end

     0   :  { %v308_v1 = vmov 0.0   ;;  %vm309_vm0 = vmmov 0   ;;  %vm35_vm1 = vcmask 261120   ;;  %s384_s0 = inlined_call_operand.vmem [shape: f32[16,32], index: 0, kind: input, shape index: {}]   ;;  %s385_s1 = inlined_call_operand.vmem [shape: bf16[32,128], index: 1, kind: input, shape index: {}]   ;;  %s386_s2 = inlined_call_operand.vmem [shape: bf16[128,32], index: 2, kind: input, shape index: {}]   ;;  %s387_s3 = inlined_call_operand.hbm [shape: f32[16,32], index: 3, kind: output, shape index: {}]  }
   0x1   :  { %v270_v0 = vld [vmem:[%s385_s1] sm:$0xff]   ;;  %237 = vmatprep.subr.bf16.mxu0 %v308_v1  ;;  %v271_v2 = vld [vmem:[%s385_s1 + $0x8] sm:$0xff]   ;;  %245 = vmatprep.subr.bf16.mxu1 %v308_v1  ;;  %v274_v8 = vld [vmem:[%s386_s2 + $0x10] sm:$0xff]  }
   0x2   :  { %238 = vmatpush3.bf16.msra.mxu0 %v270_v0  ;;  %241 = vmatprep.mubr.msk.bf16.mxu0 %vm309_vm0, %v308_v1  ;;  %v16_v3 = vld [vmem:[%s384_s0] sm:$0xff]  ;;  %v17_v4 = vld [vmem:[%s384_s0 + $0x8] sm:$0xff] }
   0x3   :  { %239 = vmatprep.subr.bf16.mxu0 %v308_v1  ;;  %v272_v5 = vld [vmem:[%s386_s2] sm:$0xff]   ;;  %261 = vmatprep.mubr.msk.bf16.mxu1 %vm309_vm0, %v308_v1  ;;  %v18_v6 = vpack.c.bf16 %v17_v4, %v16_v3  ;;  %v273_v7 = vld [vmem:[%s386_s2 + $0x8] sm:$0xff]  }
   0x4   :  { %246 = vmatpush3.bf16.msra.mxu1 %v272_v5 }
   0x5   :  { %247 = vmatprep.subr.bf16.mxu1 %v308_v1 }
   0x6   :  { %240 = vmatpush3.bf16.msra.mxu0 %v271_v2 }
   0x8   :  { %248 = vmatpush3.bf16.msra.mxu1 %v273_v7 }
   0x9   :  { %242 = vmatmul.mubr.msk.bf16.vlgmr.msra.gmra.mrb[0].mxu0 %vm35_vm1, %v18_v6 }
   0xa   :  { %8 = vsyncpa [#allocation3], 0  ;;  %249 = vmatprep.subr.bf16.mxu1 %v308_v1  ;;  %v275_v9 = vld [vmem:[%s386_s2 + $0x18] sm:$0xff]   ;;  %v276_v10 = vld [vmem:[%s386_s2 + $0x20] sm:$0xff]  }
   0xb   :  { %v277_v11 = vld [vmem:[%s386_s2 + $0x28] sm:$0xff]   ;;  %v278_v12 = vld [vmem:[%s386_s2 + $0x30] sm:$0xff]   ;;  %v279_v13 = vld [vmem:[%s386_s2 + $0x38] sm:$0xff]   ;;  %s310_s2 = smov [#allocation2]  }
   0xc   :  { %250 = vmatpush3.bf16.msra.mxu1 %v274_v8  ;;  %s203_s7 = sshll.u32 %s310_s2, 4  ;;  %s204_s7 = int_to_ptr.vmem [resolvable:$true] %s203_s7 }
   0xd   :  { %251 = vmatprep.subr.bf16.mxu1 %v308_v1  ;;  %s284_s8 = scalar_lea.vmem %s204_s7, 256  ;;  %p289_p1 = scmp.lt.s32.totalorder %s204_s7, %s204_s7 }
   0xe   :  { %p285_p0 = scmp.ne.s32.totalorder %s204_s7, %s284_s8  ;;  %p290_p2 = scmp.lt.s32.totalorder %s284_s8, %s284_s8 }
  0x10   :  { %252 = vmatpush3.bf16.msra.mxu1 %v275_v9  ;;  %p291_p3 = por %p290_p2, %p289_p1 }
  0x11   :  { %253 = vmatprep.subr.bf16.mxu1 %v308_v1 }
  0x12   :  { %p292_p4 = pnand %p291_p3, %p285_p0 }
  0x14   :  { %254 = vmatpush3.bf16.msra.mxu1 %v276_v10 }
  0x15   :  { %255 = vmatprep.subr.bf16.mxu1 %v308_v1 }
  0x18   :  { %256 = vmatpush3.bf16.msra.mxu1 %v277_v11 }
  0x19   :  { %257 = vmatprep.subr.bf16.mxu1 %v308_v1 }
  0x1c   :  { %258 = vmatpush3.bf16.msra.mxu1 %v278_v12 }
  0x1d   :  { %259 = vmatprep.subr.bf16.mxu1 %v308_v1 }
  0x20   :  { %260 = vmatpush3.bf16.msra.mxu1 %v279_v13 }
  0xdc   :  { %v73_v14 = vpop.f32.mrb[0].mxu0 }
  0xdd   :  { %v82_v15 = vmul.f32 0.70710677, %v73_v14  ;;  %v243_v16 = vpop.f32.mrb[1].mxu0  ;;  %v80_v23 = vmul.f32 0.5, %v73_v14 }
  0xde   :  { %v76_v17 = vpop.f32.mrb[2].mxu0 }
  0xdf   :  { %280 = verf.f32 %v82_v15  ;;  %v83_v18 = vmul.f32 0.70710677, %v76_v17  ;;  %v244_v19 = vpop.f32.mrb[3].mxu0  ;;  %v81_v24 = vmul.f32 0.5, %v76_v17 }
  0xe1   :  { %282 = verf.f32 %v83_v18 }
  0xe9   :  { %v281_v20 = vpop.eup %280 }
  0xea   :  { %v86_v21 = vadd.f32 1.0, %v281_v20 }
  0xeb   :  { %v283_v22 = vpop.eup %282 }
  0xec   :  { %v87_v25 = vadd.f32 1.0, %v283_v22  ;;  %v88_v26 = vmul.f32 %v86_v21, %v80_v23 }
  0xee   :  { %v89_v27 = vmul.f32 %v87_v25, %v81_v24 }
  0xf0   :  { %v90_v28 = vpack.c.bf16 %v89_v27, %v88_v26 }
  0xf2   :  { %262 = vmatmul.mubr.bf16.vlgmr.msra.gmra.mrb[0].mxu1 %v90_v28 }
 0x1c5   :  { %v189_v29 = vpop.f32.mrb[0].mxu1 }
 0x1c6   :  { %196 = vst.msk [vmem:[#allocation2] sm:$0xff] %vm35_vm1, %v189_v29  ;;  %v263_v30 = vpop.f32.mrb[1].mxu1 }
 0x1c7   :  { %v192_v31 = vpop.f32.mrb[2].mxu1 }
 0x1c8   :  { %197 = vst.msk [vmem:[#allocation2 + $0x8] sm:$0xff] %vm35_vm1, %v192_v31  ;;  %v264_v32 = vpop.f32.mrb[3].mxu1 }
 0x1c9   :  { %295 = shalt.err (!%p292_p4)
}
 0x1ca   :  { %s296_s11 = scalar_lea.hbm %s387_s3, 256 }
 0x1cb   :  { %p297_p5 = scmp.ne.s32.totalorder %s387_s3, %s296_s11  ;;  %p300_p6 = scmp.lt.u32.totalorder %s296_s11, %s387_s3 }
 0x1cd   :  { %p302_p7 = pnand %p300_p6, %p297_p5 }
 0x1cf   :  { %305 = shalt.err (!%p302_p7)
}
 0x1d0   :  { %s311_s16 = smov 128   ;;  %s312_s17 = smov 8  }
 0x1d1   :  { %209 = dma.vmem_to_hbm [thread:$0]  %s204_s7, 256, %s387_s3, [#allocation3], %s311_s16, %s311_s16, %s312_s17  }
 0x1d2   :  { %306 = dma.done.wait [#allocation3], 256  }
 0x1d3   :  { %307 = vsyncadd [#allocation3], 4294967040 }
 0x1d4   :  { %213 = vsyncpa [#allocation3], 1 }

</bundles_post_ra>
